<compile_context>
chip_gen: v5e
topology: v5e:2x2
jax: 0.10.0
libtpu: 0.0.40
codegen_flags: <defaults>
</compile_context>

<pallas_src>
import functools
import math

import jax
import jax.numpy as jnp
from jax import lax
from jax.experimental import pallas as pl
from jax.experimental.pallas import tpu as pltpu


@functools.lru_cache(maxsize=None)
def _vmem_limit_bytes():
    """Generation-aware scoped-VMEM limit (~75% of physical, capped at 100MiB)."""
    cap = 64 * 1024 * 1024  # conservative default = v7x physical VMEM / core
    try:
        info = pltpu.get_tpu_info()
        cap = int(getattr(info, "vmem_capacity_bytes", cap)) or cap
    except Exception:
        pass
    return int(min(cap * 3 // 4, 100 * 1024 * 1024))


def _sublane_granule(dtype):
    """Second-to-last-dim tiling granule by element width."""
    return {4: 8, 2: 16, 1: 32}.get(jnp.dtype(dtype).itemsize, 8)


def _pick_tile(dim, target, granule):
    """Largest tile <= target that divides `dim` and is a multiple of `granule`.
    Falls back to the full dim (always a legal block)."""
    if dim <= target:
        return dim
    t = (min(target, dim) // granule) * granule
    while t >= granule:
        if dim % t == 0:
            return t
        t -= granule
    return dim


# ---------------------------------------------------------------------------
# Linear projection: out = x @ w + b
# ---------------------------------------------------------------------------
def _linear_ws_kernel(x_ref, w_ref, b_ref, o_ref):
    # Weight-stationary: full (K, N) weight resident, stream M tiles.
    acc = jnp.dot(x_ref[...], w_ref[...], preferred_element_type=jnp.float32)
    o_ref[...] = (acc + b_ref[...].astype(jnp.float32)).astype(o_ref.dtype)


def _linear_tiled_kernel(x_ref, w_ref, b_ref, o_ref, acc_ref):
    kk = pl.program_id(2)

    @pl.when(kk == 0)
    def _():
        acc_ref[...] = jnp.zeros_like(acc_ref)

    acc_ref[...] += jnp.dot(x_ref[...], w_ref[...],
                            preferred_element_type=jnp.float32)

    @pl.when(kk == pl.num_programs(2) - 1)
    def _():
        o_ref[...] = (acc_ref[...] +
                      b_ref[...].astype(jnp.float32)).astype(o_ref.dtype)


def pallas_linear(x2d, w, b, *, tm_target=1024, tn=512, tk=512):
    """x2d: (M, K), w: (K, N), b: (N,) -> (M, N)."""
    M, K = x2d.shape
    Kw, N = w.shape
    assert K == Kw
    dtype = x2d.dtype
    itm = jnp.dtype(dtype).itemsize
    sub = _sublane_granule(dtype)
    limit = _vmem_limit_bytes()
    budget = int(limit * 0.8)
    b2d = b.reshape(1, N).astype(dtype)

    # ---- Weight-stationary path: whole weight in VMEM, loaded once. ----
    weight_bytes = 2 * (K * N + N) * itm          # weight + bias (2 buffers)
    per_row = 2 * (K + N) * itm                   # x-tile + out-tile per row
    if weight_bytes < budget and (budget - weight_bytes) // per_row >= min(sub, M):
        tm_fit = (budget - weight_bytes) // per_row
        TM = _pick_tile(M, min(tm_target, int(tm_fit)), sub)
        if weight_bytes + per_row * TM <= budget:
            return pl.pallas_call(
                _linear_ws_kernel,
                out_shape=jax.ShapeDtypeStruct((M, N), dtype),
                grid=(M // TM,),
                in_specs=[
                    pl.BlockSpec((TM, K), lambda m: (m, 0)),
                    pl.BlockSpec((K, N), lambda m: (0, 0)),   # stationary weight
                    pl.BlockSpec((1, N), lambda m: (0, 0)),
                ],
                out_specs=pl.BlockSpec((TM, N), lambda m: (m, 0)),
                compiler_params=pltpu.CompilerParams(
                    dimension_semantics=("parallel",),
                    vmem_limit_bytes=limit,
                ),
            )(x2d, w, b2d)

    # ---- Fallback: tiled over (M, N, K) with resident f32 accumulator. ----
    TM = _pick_tile(M, 512, sub)
    TN = _pick_tile(N, tn, 128)
    TK = _pick_tile(K, tk, 128)
    grid = (M // TM, N // TN, K // TK)
    return pl.pallas_call(
        _linear_tiled_kernel,
        out_shape=jax.ShapeDtypeStruct((M, N), dtype),
        grid=grid,
        in_specs=[
            pl.BlockSpec((TM, TK), lambda i, j, kk: (i, kk)),
            pl.BlockSpec((TK, TN), lambda i, j, kk: (kk, j)),
            pl.BlockSpec((1, TN), lambda i, j, kk: (0, j)),
        ],
        out_specs=pl.BlockSpec((TM, TN), lambda i, j, kk: (i, j)),
        scratch_shapes=[pltpu.VMEM((TM, TN), jnp.float32)],
        compiler_params=pltpu.CompilerParams(
            dimension_semantics=("parallel", "parallel", "arbitrary"),
            vmem_limit_bytes=limit,
        ),
    )(x2d, w, b2d)


# ---------------------------------------------------------------------------
# Flash-style attention, all heads packed along the last dim.
# ---------------------------------------------------------------------------
def _flash_attn_kernel(q_ref, k_ref, v_ref, o_ref, m_ref, l_ref, acc_ref,
                       *, num_heads, head_dim, scale):
    ki = pl.program_id(2)

    @pl.when(ki == 0)
    def _():
        m_ref[...] = jnp.full_like(m_ref, -jnp.inf)
        l_ref[...] = jnp.zeros_like(l_ref)
        acc_ref[...] = jnp.zeros_like(acc_ref)

    # Fold the softmax scale into q once per tile (TQ*D multiplies instead of
    # num_heads*TQ*TK).
    q = q_ref[0] * jnp.asarray(scale, dtype=q_ref.dtype)   # (TQ, nh*hd)
    k = k_ref[0]                                           # (TK, nh*hd)
    v = v_ref[0]                                           # (TK, nh*hd)

    for h in range(num_heads):
        sl = slice(h * head_dim, (h + 1) * head_dim)
        q_h = q[:, sl]
        k_h = k[:, sl]
        v_h = v[:, sl]
        # scores (TQ, TK): MXU in native dtype, f32 accumulate.
        s = lax.dot_general(q_h, k_h, (((1,), (1,)), ((), ())),
                            preferred_element_type=jnp.float32)
        m_prev = m_ref[h]                                          # (TQ, 1)
        m_new = jnp.maximum(m_prev, jnp.max(s, axis=-1, keepdims=True))
        alpha = jnp.exp(m_prev - m_new)                            # (TQ, 1)
        p = jnp.exp(s - m_new)                                     # (TQ, TK)
        l_ref[h] = alpha * l_ref[h] + jnp.sum(p, axis=-1, keepdims=True)
        m_ref[h] = m_new
        pv = jnp.dot(p.astype(v_h.dtype), v_h,
                     preferred_element_type=jnp.float32)           # (TQ, hd)
        # Per-head in-place update keeps live ranges to one head (no concat).
        acc_ref[:, sl] = alpha * acc_ref[:, sl] + pv

    @pl.when(ki == pl.num_programs(2) - 1)
    def _():
        for h in range(num_heads):
            sl = slice(h * head_dim, (h + 1) * head_dim)
            inv = pl.reciprocal(l_ref[h], approx=True)             # EUP vrcp
            o_ref[0, :, sl] = (acc_ref[:, sl] * inv).astype(o_ref.dtype)


def _attn_tiles(B, S, D, dtype, num_heads, q_tile, kv_tile):
    """Pick (TQ, TK) under the per-generation VMEM budget."""
    sub = _sublane_granule(dtype)
    itm = jnp.dtype(dtype).itemsize
    budget = int(_vmem_limit_bytes() * 0.8)
    TQ = _pick_tile(S, q_tile, sub)
    TK = _pick_tile(S, kv_tile, sub)

    def usage(tq, tk):
        return (2 * tq * D * itm          # q block (double-buffered)
                + 2 * 2 * tk * D * itm    # k + v blocks
                + 2 * tq * D * itm        # output block
                + tq * D * 4              # f32 accumulator scratch
                + 2 * num_heads * tq * 4)  # running m / l stats

    prev = None
    while usage(TQ, TK) > budget and (TQ, TK) != prev:
        prev = (TQ, TK)
        if TQ >= TK and TQ > sub:
            TQ = _pick_tile(S, max(TQ // 2, sub), sub)
        elif TK > sub:
            TK = _pick_tile(S, max(TK // 2, sub), sub)
        else:
            break

    # Keep >= 2 parallel grid steps so both TensorCores (v7x megacore) get work.
    while B * (S // TQ) < 2:
        smaller = _pick_tile(S, max(TQ // 2, sub), sub)
        if smaller >= TQ:
            break
        TQ = smaller
    return TQ, TK


def pallas_flash_attention(qkv, *, num_heads, dim_out, q_tile=512, kv_tile=512):
    """qkv: (B, S, 3*dim_out) with columns laid out as (3, num_heads, head_dim).
    Returns attention output (B, S, dim_out), heads packed along last dim."""
    B, S, D3 = qkv.shape
    assert D3 == 3 * dim_out
    head_dim = dim_out // num_heads
    dtype = qkv.dtype
    TQ, TK = _attn_tiles(B, S, dim_out, dtype, num_heads, q_tile, kv_tile)
    grid = (B, S // TQ, S // TK)
    kernel = functools.partial(
        _flash_attn_kernel, num_heads=num_heads, head_dim=head_dim,
        scale=1.0 / math.sqrt(head_dim))
    out_shape = jax.ShapeDtypeStruct((B, S, dim_out), dtype)
    o_spec = pl.BlockSpec((1, TQ, dim_out), lambda b, qi, ki: (b, qi, 0))
    scratch = [
        pltpu.VMEM((num_heads, TQ, 1), jnp.float32),   # running max m
        pltpu.VMEM((num_heads, TQ, 1), jnp.float32),   # running sum l
        pltpu.VMEM((TQ, dim_out), jnp.float32),        # output accumulator
    ]
    cparams = pltpu.CompilerParams(
        dimension_semantics=("parallel", "parallel", "arbitrary"),
        vmem_limit_bytes=_vmem_limit_bytes(),
    )

    if dim_out % 128 == 0:
        # Packed fast path: read q/k/v directly out of qkv via last-dim block
        # indices 0/1/2 -> no materialized q/k/v HBM copies.
        q_spec = pl.BlockSpec((1, TQ, dim_out), lambda b, qi, ki: (b, qi, 0))
        k_spec = pl.BlockSpec((1, TK, dim_out), lambda b, qi, ki: (b, ki, 1))
        v_spec = pl.BlockSpec((1, TK, dim_out), lambda b, qi, ki: (b, ki, 2))
        return pl.pallas_call(
            kernel, out_shape=out_shape, grid=grid,
            in_specs=[q_spec, k_spec, v_spec], out_specs=o_spec,
            scratch_shapes=scratch, compiler_params=cparams,
        )(qkv, qkv, qkv)

    # Fallback: a dim_out-wide last-dim block is only legal when dim_out is a
    # multiple of 128, so slice q/k/v in the wrapper (extra HBM copies).
    q = qkv[:, :, 0 * dim_out:1 * dim_out]
    k = qkv[:, :, 1 * dim_out:2 * dim_out]
    v = qkv[:, :, 2 * dim_out:3 * dim_out]
    q_spec = pl.BlockSpec((1, TQ, dim_out), lambda b, qi, ki: (b, qi, 0))
    kv_spec = pl.BlockSpec((1, TK, dim_out), lambda b, qi, ki: (b, ki, 0))
    return pl.pallas_call(
        kernel, out_shape=out_shape, grid=grid,
        in_specs=[q_spec, kv_spec, kv_spec], out_specs=o_spec,
        scratch_shapes=scratch, compiler_params=cparams,
    )(q, k, v)


# ---------------------------------------------------------------------------
# MultiScaleAttention forward (q_pool=None path)
# ---------------------------------------------------------------------------
def multi_scale_attention(x, params, num_heads, *, compute_dtype=None,
                          q_tile=512, kv_tile=512):
    """x: (B, H, W, dim) -> (B, H, W, dim_out)."""
    B, H, W, dim = x.shape
    w_qkv, b_qkv = params["w_qkv"], params["b_qkv"]
    w_proj, b_proj = params["w_proj"], params["b_proj"]
    dim_out = w_proj.shape[1]
    S = H * W
    out_dtype = x.dtype
    if compute_dtype is not None:      # e.g. bf16 MXU operands on v6e/v7x
        x = x.astype(compute_dtype)
        w_qkv = w_qkv.astype(compute_dtype)
        b_qkv = b_qkv.astype(compute_dtype)
        w_proj = w_proj.astype(compute_dtype)
        b_proj = b_proj.astype(compute_dtype)

    # qkv projection: (B*S, dim) @ (dim, 3*dim_out) + bias
    qkv = pallas_linear(x.reshape(B * S, dim), w_qkv, b_qkv)
    qkv = qkv.reshape(B, S, 3 * dim_out)

    # TODO(synk): q_pool (conv/maxpool on queries via do_pool) not implemented;
    # module default is q_pool=None so this path matches the reference.

    o = pallas_flash_attention(qkv, num_heads=num_heads, dim_out=dim_out,
                               q_tile=q_tile, kv_tile=kv_tile)   # (B, S, dim_out)

    out = pallas_linear(o.reshape(B * S, dim_out), w_proj, b_proj)
    return out.reshape(B, H, W, dim_out).astype(out_dtype)


# ---------------------------------------------------------------------------
# Pure-JAX reference (for numerical check)
# ---------------------------------------------------------------------------
def reference(x, params, num_heads):
    B, H, W, dim = x.shape
    w_qkv, b_qkv = params["w_qkv"], params["b_qkv"]
    w_proj, b_proj = params["w_proj"], params["b_proj"]
    dim_out = w_proj.shape[1]
    hd = dim_out // num_heads
    S = H * W
    qkv = x.reshape(B * S, dim) @ w_qkv + b_qkv
    qkv = qkv.reshape(B, S, 3, num_heads, hd)
    q, k, v = qkv[:, :, 0], qkv[:, :, 1], qkv[:, :, 2]
    q = jnp.transpose(q, (0, 2, 1, 3))
    k = jnp.transpose(k, (0, 2, 1, 3))
    v = jnp.transpose(v, (0, 2, 1, 3))
    s = jnp.einsum("bhqd,bhkd->bhqk", q, k) / math.sqrt(hd)
    p = jax.nn.softmax(s, axis=-1)
    o = jnp.einsum("bhqk,bhkd->bhqd", p, v)
    o = jnp.transpose(o, (0, 2, 1, 3)).reshape(B * S, dim_out)
    return (o @ w_proj + b_proj).reshape(B, H, W, dim_out)


# ---------------------------------------------------------------------------
if __name__ == "__main__":
    key = jax.random.PRNGKey(0)

    def make_inputs(k, B, H, W, dim, dim_out):
        kx, k1, k2, k3, k4 = jax.random.split(k, 5)
        x = jax.random.normal(kx, (B, H, W, dim), dtype=jnp.float32)
        params = {
            "w_qkv": jax.random.normal(k1, (dim, 3 * dim_out), jnp.float32) * 0.05,
            "b_qkv": jax.random.normal(k2, (3 * dim_out,), jnp.float32) * 0.05,
            "w_proj": jax.random.normal(k3, (dim_out, dim_out), jnp.float32) * 0.05,
            "b_proj": jax.random.normal(k4, (dim_out,), jnp.float32) * 0.05,
        }
        return x, params

    k_a, k_b = jax.random.split(key)

    # 1) Lane-dense config (dim_out % 128 == 0): packed-qkv fast path, f32.
    x, params = make_inputs(k_a, B=2, H=8, W=8, dim=96, dim_out=128)
    num_heads = 2
    ref = reference(x, params, num_heads)
    out = jax.block_until_ready(multi_scale_attention(x, params, num_heads))
    assert out.shape == ref.shape, out.shape
    assert jnp.allclose(out, ref, atol=5e-3, rtol=5e-3), (
        float(jnp.max(jnp.abs(out - ref))))

    # 2) Small tiles -> multi-KV-step online-softmax path.
    out_s = jax.block_until_ready(
        multi_scale_attention(x, params, num_heads, q_tile=32, kv_tile=32))
    assert jnp.allclose(out_s, ref, atol=5e-3, rtol=5e-3), (
        float(jnp.max(jnp.abs(out_s - ref))))

    # 3) bf16 MXU operands (v6e/v7x recommendation), loose tolerance.
    out_bf = jax.block_until_ready(
        multi_scale_attention(x, params, num_heads, compute_dtype=jnp.bfloat16))
    assert jnp.allclose(out_bf, ref, atol=6e-2, rtol=6e-2), (
        float(jnp.max(jnp.abs(out_bf - ref))))

    # 4) dim_out not a multiple of 128 -> wrapper-slice fallback path.
    x2, params2 = make_inputs(k_b, B=1, H=8, W=8, dim=32, dim_out=96)
    ref2 = reference(x2, params2, num_heads=3)
    out2 = jax.block_until_ready(
        multi_scale_attention(x2, params2, num_heads=3, q_tile=16, kv_tile=16))
    assert jnp.allclose(out2, ref2, atol=5e-3, rtol=5e-3), (
        float(jnp.max(jnp.abs(out2 - ref2))))

    print("KERNEL_OK")
</pallas_src>

<mosaic_0001>
module attributes {stable_mosaic.version = 11 : i64} {
  func.func @_linear_ws_kernel(%arg0: i32, %arg1: memref<128x96xf32, #tpu.memory_space<vmem>>, %arg2: memref<96x384xf32, #tpu.memory_space<vmem>>, %arg3: memref<1x384xf32, #tpu.memory_space<vmem>>, %arg4: memref<128x384xf32, #tpu.memory_space<vmem>>) attributes {dimension_semantics = [#tpu.dimension_semantics<parallel>], iteration_bounds = array<i64: 1>, scalar_prefetch = 0 : i64, scratch_operands = 0 : i64, tpu.core_type = #tpu.core_type<tc>, window_params = [{transform_indices = @transform_0, window_bounds = array<i64: 128, 96>}, {pipeline_mode = #tpu.pipeline_mode<synchronous>, transform_indices = @transform_1, window_bounds = array<i64: 96, 384>}, {pipeline_mode = #tpu.pipeline_mode<synchronous>, transform_indices = @transform_2, window_bounds = array<i64: 1, 384>}, {transform_indices = @transform_3, window_bounds = array<i64: 128, 384>}]} {
    %c0 = arith.constant 0 : index
    %c0_0 = arith.constant 0 : index
    %0 = vector.load %arg1[%c0, %c0_0] : memref<128x96xf32, #tpu.memory_space<vmem>>, vector<128x96xf32>
    %c0_1 = arith.constant 0 : index
    %c0_2 = arith.constant 0 : index
    %1 = vector.load %arg2[%c0_1, %c0_2] : memref<96x384xf32, #tpu.memory_space<vmem>>, vector<96x384xf32>
    %cst = arith.constant dense<0.000000e+00> : vector<128x384xf32>
    %2 = tpu.matmul %0, %1, %cst {dimension_numbers = #tpu.dot_dimension_numbers<[1], [0], [0], [1], [0, 0, 1, 1], [], []>} : vector<128x96xf32>, vector<96x384xf32>, vector<128x384xf32> -> vector<128x384xf32>
    %c0_3 = arith.constant 0 : index
    %c0_4 = arith.constant 0 : index
    %3 = vector.load %arg3[%c0_3, %c0_4] : memref<1x384xf32, #tpu.memory_space<vmem>>, vector<1x384xf32>
    %4 = vector.broadcast %3 : vector<1x384xf32> to vector<128x384xf32>
    %5 = arith.addf %2, %4 : vector<128x384xf32>
    %c0_5 = arith.constant 0 : index
    %c0_6 = arith.constant 0 : index
    %6 = vector.load %arg4[%c0_5, %c0_6] : memref<128x384xf32, #tpu.memory_space<vmem>>, vector<128x384xf32>
    tpu.vector_store %arg4[%c0_5, %c0_6], %5 {strides = array<i32>} : memref<128x384xf32, #tpu.memory_space<vmem>>, vector<128x384xf32>,
    return
  }
  func.func @transform_0(%arg0: i32) -> (i32, i32) {
    %c0_i32 = arith.constant 0 : i32
    %c0_i32_0 = arith.constant 0 : i32
    return %arg0, %c0_i32 : i32, i32
  }
  func.func @transform_1(%arg0: i32) -> (i32, i32) {
    %c0_i32 = arith.constant 0 : i32
    %c0_i32_0 = arith.constant 0 : i32
    %c0_i32_1 = arith.constant 0 : i32
    return %c0_i32, %c0_i32_0 : i32, i32
  }
  func.func @transform_2(%arg0: i32) -> (i32, i32) {
    %c0_i32 = arith.constant 0 : i32
    %c0_i32_0 = arith.constant 0 : i32
    %c0_i32_1 = arith.constant 0 : i32
    return %c0_i32, %c0_i32_0 : i32, i32
  }
  func.func @transform_3(%arg0: i32) -> (i32, i32) {
    %c0_i32 = arith.constant 0 : i32
    %c0_i32_0 = arith.constant 0 : i32
    return %arg0, %c0_i32 : i32, i32
  }
}

</mosaic_0001>

<bundles_post_ra>
// kernel: tpu_custom_call.1
= control target key start
LH: loop header
LB: loop body
LE: loop exit
PB: predicated region body
PF: predicated region fallthrough
CT: control target
= control target key end

     0   :  { %8 = vsyncpa [#allocation3], 0  ;;  %s809_s0 = inlined_call_operand.vmem [shape: f32[128,96], index: 0, kind: input, shape index: {}]   ;;  %s810_s1 = inlined_call_operand.hbm [shape: f32[96,384], index: 1, kind: input, shape index: {}]   ;;  %s811_s2 = inlined_call_operand.vmem [shape: f32[1,384], index: 2, kind: input, shape index: {}]   ;;  %s812_s3 = inlined_call_operand.hbm [shape: f32[128,384], index: 3, kind: output, shape index: {}]  }
   0x1   :  { %9 = vsyncpa [#allocation4], 0  ;;  %s16_s14 = sshll.u32 %s810_s1, 4  ;;  %s542_s15 = smov [#allocation2]   ;;  %s17_s14 = int_to_ptr.hbm [resolvable:$true] %s16_s14 }
   0x2   :  { %s18_s16 = sshll.u32 %s542_s15, 4  ;;  %s543_s17 = smov 384   ;;  %s19_s16 = int_to_ptr.vmem [resolvable:$true] %s18_s16 }
   0x3   :  { %s544_s18 = smov 24  }
   0x4   :  { %24 = dma.hbm_to_vmem [thread:$0]  %s17_s14, 4608, %s19_s16, [#allocation3], %s543_s17, %s543_s17, %s544_s18  }
   0x5   :  { %538 = dma.done.wait [#allocation3], 4608  }
   0x6   :  { %539 = vsyncadd [#allocation3], 4294962688  ;;  %v80_v0 = vld [vmem:[#allocation2 + $0x108] sm:$0xff]  ;;  %v572_v1 = vld [vmem:[#allocation2 + $0x118] sm:$0xff]  ;;  %vm91_vm0 = vcmask 785408   ;;  %s389_s28 = sshll.u32 %s812_s3, 4  ;;  %s390_s28 = int_to_ptr.hbm [resolvable:$true] %s389_s28 }
   0x7   :  { %v77_v2 = vld [vmem:[#allocation2 + $0xf0] sm:$0xff]  ;;  %450 = vmatpush.msra.mxu3 %v80_v0  ;;  %274 = vmatpush.msra.mxu2 %v572_v1  ;;  %v575_v3 = vld [vmem:[#allocation2 + $0x100] sm:$0xff]  ;;  %v74_v4 = vld [vmem:[#allocation2 + $0xd8] sm:$0xff] }
   0x8   :  { %v577_v5 = vld [vmem:[#allocation2 + $0xe8] sm:$0xff]  ;;  %144 = vmatpush.msra.mxu0 %v80_v0  ;;  %v579_v6 = vld [vmem:[#allocation2 + $0x110] sm:$0xff]  ;;  %v582_v7 = vld [vmem:[#allocation2 + $0xf8] sm:$0xff] }
   0x9   :  { %451 = vmatpush.msra.mxu3 %v77_v2  ;;  %275 = vmatpush.msra.mxu2 %v575_v3  ;;  %v71_v8 = vld [vmem:[#allocation2 + $0xc0] sm:$0xff]  ;;  %v585_v9 = vld [vmem:[#allocation2 + $0xd0] sm:$0xff]  ;;  %v68_v11 = vld [vmem:[#allocation2 + $0xa8] sm:$0xff] }
   0xa   :  { %209 = vmatpush.msra.mxu1 %v579_v6  ;;  %145 = vmatpush.msra.mxu0 %v77_v2  ;;  %v588_v10 = vld [vmem:[#allocation2 + $0xe0] sm:$0xff]  ;;  %v591_v12 = vld [vmem:[#allocation2 + $0xb8] sm:$0xff]  ;;  %v594_v13 = vld [vmem:[#allocation2 + $0xc8] sm:$0xff] }
   0xb   :  { %452 = vmatpush.msra.mxu3 %v74_v4  ;;  %276 = vmatpush.msra.mxu2 %v577_v5  ;;  %v65_v14 = vld [vmem:[#allocation2 + $0x90] sm:$0xff]  ;;  %v597_v15 = vld [vmem:[#allocation2 + $0xa0] sm:$0xff]  ;;  %v62_v17 = vld [vmem:[#allocation2 + $0x78] sm:$0xff] }
   0xc   :  { %210 = vmatpush.msra.mxu1 %v582_v7  ;;  %146 = vmatpush.msra.mxu0 %v74_v4  ;;  %v600_v16 = vld [vmem:[#allocation2 + $0xb0] sm:$0xff]  ;;  %v603_v18 = vld [vmem:[#allocation2 + $0x88] sm:$0xff]  ;;  %v66_v19 = vld [vmem:[#allocation2 + $0x98] sm:$0xff] }
   0xd   :  { %453 = vmatpush.msra.mxu3 %v71_v8  ;;  %277 = vmatpush.msra.mxu2 %v585_v9  ;;  %v59_v20 = vld [vmem:[#allocation2 + $0x60] sm:$0xff]  ;;  %v607_v21 = vld [vmem:[#allocation2 + $0x70] sm:$0xff]  ;;  %v56_v23 = vld [vmem:[#allocation2 + $0x48] sm:$0xff] }
   0xe   :  { %211 = vmatpush.msra.mxu1 %v588_v10  ;;  %147 = vmatpush.msra.mxu0 %v71_v8  ;;  %v63_v22 = vld [vmem:[#allocation2 + $0x80] sm:$0xff]  ;;  %v610_v24 = vld [vmem:[#allocation2 + $0x58] sm:$0xff]  ;;  %v60_v25 = vld [vmem:[#allocation2 + $0x68] sm:$0xff] }
   0xf   :  { %454 = vmatpush.msra.mxu3 %v68_v11  ;;  %278 = vmatpush.msra.mxu2 %v591_v12  ;;  %v53_v26 = vld [vmem:[#allocation2 + $0x30] sm:$0xff]  ;;  %v613_v27 = vld [vmem:[#allocation2 + $0x40] sm:$0xff]  ;;  %v50_v29 = vld [vmem:[#allocation2 + $0x18] sm:$0xff] }
  0x10   :  { %212 = vmatpush.msra.mxu1 %v594_v13  ;;  %148 = vmatpush.msra.mxu0 %v68_v11  ;;  %v57_v28 = vld [vmem:[#allocation2 + $0x50] sm:$0xff]  ;;  %v616_v30 = vld [vmem:[#allocation2 + $0x28] sm:$0xff]  ;;  %v54_v31 = vld [vmem:[#allocation2 + $0x38] sm:$0xff] }
  0x11   :  { %455 = vmatpush.msra.mxu3 %v65_v14  ;;  %279 = vmatpush.msra.mxu2 %v597_v15  ;;  %v47_v32 = vld [vmem:[#allocation2] sm:$0xff]  ;;  %v619_v33 = vld [vmem:[#allocation2 + $0x10] sm:$0xff]  ;;  %v48_v37 = vld [vmem:[#allocation2 + $0x8] sm:$0xff] }
  0x12   :  { %213 = vmatpush.msra.mxu1 %v600_v16  ;;  %149 = vmatpush.msra.mxu0 %v65_v14  ;;  %v625_v34 = vld [vmem:[%s809_s0 + $0x60] sm:$0xff]  ;;  %v642_v38 = vld [vmem:[%s809_s0 + $0x68] sm:$0xff]  ;;  %v45_v40 = vld [vmem:[%s809_s0 + $0x70] sm:$0xff] }
  0x13   :  { %456 = vmatpush.msra.mxu3 %v62_v17  ;;  %280 = vmatpush.msra.mxu2 %v603_v18  ;;  %v31_v35 = vld [vmem:[%s809_s0] sm:$0xff]  ;;  %v32_v39 = vld [vmem:[%s809_s0 + $0x8] sm:$0xff]  ;;  %v33_v41 = vld [vmem:[%s809_s0 + $0x10] sm:$0xff] }
  0x14   :  { %214 = vmatpush.msra.mxu1 %v66_v19  ;;  %150 = vmatpush.msra.mxu0 %v62_v17  ;;  %v51_v36 = vld [vmem:[#allocation2 + $0x20] sm:$0xff]  ;;  %v46_v42 = vld [vmem:[%s809_s0 + $0x78] sm:$0xff]  ;;  %v36_v45 = vld [vmem:[%s809_s0 + $0x28] sm:$0xff] }
  0x15   :  { %457 = vmatpush.msra.mxu3 %v59_v20  ;;  %281 = vmatpush.msra.mxu2 %v607_v21  ;;  %v34_v43 = vld [vmem:[%s809_s0 + $0x18] sm:$0xff]  ;;  %v35_v44 = vld [vmem:[%s809_s0 + $0x20] sm:$0xff]  ;;  %v37_v46 = vld [vmem:[%s809_s0 + $0x30] sm:$0xff] }
  0x16   :  { %215 = vmatpush.msra.mxu1 %v63_v22  ;;  %151 = vmatpush.msra.mxu0 %v59_v20  ;;  %v38_v47 = vld [vmem:[%s809_s0 + $0x38] sm:$0xff]  ;;  %v39_v48 = vld [vmem:[%s809_s0 + $0x40] sm:$0xff]  ;;  %v40_v49 = vld [vmem:[%s809_s0 + $0x48] sm:$0xff] }
  0x17   :  { %458 = vmatpush.msra.mxu3 %v56_v23  ;;  %282 = vmatpush.msra.mxu2 %v610_v24  ;;  %v41_v50 = vld [vmem:[%s809_s0 + $0x50] sm:$0xff]  ;;  %v42_v51 = vld [vmem:[%s809_s0 + $0x58] sm:$0xff]  ;;  %v83_v52 = vld [vmem:[%s811_s2] sm:$0x7]  ;;  %s545_s0 = smov [#allocation5]  }
  0x18   :  { %216 = vmatpush.msra.mxu1 %v60_v25  ;;  %152 = vmatpush.msra.mxu0 %v56_v23  ;;  %v749_v53 = vperm.slane %v83_v52, 0  ;;  %v751_v54 = vperm.slane %v83_v52, 1  ;;  %v753_v55 = vperm.slane %v83_v52, 2  ;;  %s387_s2 = sshll.u32 %s545_s0, 4  ;;  %s388_s2 = int_to_ptr.vmem [resolvable:$true] %s387_s2 }
  0x19   :  { %459 = vmatpush.msra.mxu3 %v53_v26  ;;  %283 = vmatpush.msra.mxu2 %v613_v27 }
  0x1a   :  { %217 = vmatpush.msra.mxu1 %v57_v28  ;;  %153 = vmatpush.msra.mxu0 %v53_v26 }
  0x1b   :  { %460 = vmatpush.msra.mxu3 %v50_v29  ;;  %284 = vmatpush.msra.mxu2 %v616_v30 }
  0x1c   :  { %218 = vmatpush.msra.mxu1 %v54_v31  ;;  %154 = vmatpush.msra.mxu0 %v50_v29 }
  0x1d   :  { %461 = vmatpush.msra.mxu3 %v47_v32  ;;  %285 = vmatpush.msra.mxu2 %v619_v33 }
  0x1e   :  { %414 = vmatmul.msk.f32.vlgmr.msra.gmra.mxu3 %vm91_vm0, %v625_v34  ;;  %434 = vmatmul.msk.f32.vlgmr.msra.gmra.mxu2 %vm91_vm0, %v31_v35 }
  0x1f   :  { %462 = vmatpush.msrb.mxu3 %v579_v6  ;;  %219 = vmatpush.msra.mxu1 %v51_v36 }
  0x20   :  { %155 = vmatpush.msra.mxu0 %v47_v32 }
  0x21   :  { %463 = vmatpush.msrb.mxu3 %v582_v7  ;;  %220 = vmatpush.msra.mxu1 %v48_v37 }
  0x22   :  { %402 = vmatmul.msk.f32.vlgmr.msra.gmra.mxu0 %vm91_vm0, %v31_v35  ;;  %418 = vmatmul.msk.f32.vlgmr.msra.gmra.mxu1 %vm91_vm0, %v31_v35 }
  0x23   :  { %464 = vmatpush.msrb.mxu3 %v588_v10 }
  0x25   :  { %465 = vmatpush.msrb.mxu3 %v594_v13 }
  0x26   :  { %415 = vmatmul.msk.f32.gmra.mxu3 %vm91_vm0, %v642_v38  ;;  %435 = vmatmul.msk.f32.gmra.mxu2 %vm91_vm0, %v32_v39 }
  0x27   :  { %466 = vmatpush.msrb.mxu3 %v600_v16 }
  0x29   :  { %467 = vmatpush.msrb.mxu3 %v66_v19 }
  0x2a   :  { %403 = vmatmul.msk.f32.gmra.mxu0 %vm91_vm0, %v32_v39  ;;  %419 = vmatmul.msk.f32.gmra.mxu1 %vm91_vm0, %v32_v39 }
  0x2b   :  { %468 = vmatpush.msrb.mxu3 %v63_v22 }
  0x2d   :  { %469 = vmatpush.msrb.mxu3 %v60_v25 }
  0x2e   :  { %416 = vmatmul.msk.f32.gmra.mxu3 %vm91_vm0, %v45_v40  ;;  %436 = vmatmul.msk.f32.gmra.mxu2 %vm91_vm0, %v33_v41 }
  0x2f   :  { %470 = vmatpush.msrb.mxu3 %v57_v28 }
  0x31   :  { %471 = vmatpush.msrb.mxu3 %v54_v31 }
  0x32   :  { %404 = vmatmul.msk.f32.gmra.mxu0 %vm91_vm0, %v33_v41  ;;  %420 = vmatmul.msk.f32.gmra.mxu1 %vm91_vm0, %v33_v41 }
  0x33   :  { %472 = vmatpush.msrb.mxu3 %v51_v36 }
  0x35   :  { %473 = vmatpush.msrb.mxu3 %v48_v37 }
  0x36   :  { %417 = vmatmul.msk.f32.gmra.mxu3 %vm91_vm0, %v46_v42  ;;  %437 = vmatmul.msk.f32.gmra.mxu2 %vm91_vm0, %v34_v43 }
  0x37   :  { %474 = vmatpush.msra.mxu3 %v572_v1 }
  0x39   :  { %475 = vmatpush.msra.mxu3 %v575_v3 }
  0x3a   :  { %405 = vmatmul.msk.f32.gmra.mxu0 %vm91_vm0, %v34_v43  ;;  %421 = vmatmul.msk.f32.gmra.mxu1 %vm91_vm0, %v34_v43 }
  0x3b   :  { %476 = vmatpush.msra.mxu3 %v577_v5 }
  0x3d   :  { %477 = vmatpush.msra.mxu3 %v585_v9 }
  0x3e   :  { %430 = vmatmul.msk.f32.vlgmr.msrb.gmra.mxu3 %vm91_vm0, %v625_v34  ;;  %438 = vmatmul.msk.f32.gmra.mxu2 %vm91_vm0, %v35_v44 }
  0x3f   :  { %478 = vmatpush.msra.mxu3 %v591_v12 }
  0x41   :  { %479 = vmatpush.msra.mxu3 %v597_v15 }
  0x42   :  { %406 = vmatmul.msk.f32.gmra.mxu0 %vm91_vm0, %v35_v44  ;;  %422 = vmatmul.msk.f32.gmra.mxu1 %vm91_vm0, %v35_v44 }
  0x43   :  { %480 = vmatpush.msra.mxu3 %v603_v18 }
  0x45   :  { %481 = vmatpush.msra.mxu3 %v607_v21 }
  0x46   :  { %431 = vmatmul.msk.f32.gmra.mxu3 %vm91_vm0, %v642_v38  ;;  %439 = vmatmul.msk.f32.gmra.mxu2 %vm91_vm0, %v36_v45 }
  0x47   :  { %482 = vmatpush.msra.mxu3 %v610_v24 }
  0x49   :  { %483 = vmatpush.msra.mxu3 %v613_v27 }
  0x4a   :  { %407 = vmatmul.msk.f32.gmra.mxu0 %vm91_vm0, %v36_v45  ;;  %423 = vmatmul.msk.f32.gmra.mxu1 %vm91_vm0, %v36_v45 }
  0x4b   :  { %484 = vmatpush.msra.mxu3 %v616_v30 }
  0x4d   :  { %485 = vmatpush.msra.mxu3 %v619_v33 }
  0x4e   :  { %432 = vmatmul.msk.f32.gmra.mxu3 %vm91_vm0, %v45_v40  ;;  %440 = vmatmul.msk.f32.gmra.mxu2 %vm91_vm0, %v37_v46 }
  0x52   :  { %408 = vmatmul.msk.f32.gmra.mxu0 %vm91_vm0, %v37_v46  ;;  %424 = vmatmul.msk.f32.gmra.mxu1 %vm91_vm0, %v37_v46 }
  0x56   :  { %433 = vmatmul.msk.f32.gmra.mxu3 %vm91_vm0, %v46_v42  ;;  %441 = vmatmul.msk.f32.gmra.mxu2 %vm91_vm0, %v38_v47 }
  0x5a   :  { %409 = vmatmul.msk.f32.gmra.mxu0 %vm91_vm0, %v38_v47  ;;  %425 = vmatmul.msk.f32.gmra.mxu1 %vm91_vm0, %v38_v47 }
  0x5e   :  { %442 = vmatmul.msk.f32.gmra.mxu2 %vm91_vm0, %v39_v48  ;;  %446 = vmatmul.msk.f32.vlgmr.msra.gmra.mxu3 %vm91_vm0, %v625_v34 }
  0x62   :  { %410 = vmatmul.msk.f32.gmra.mxu0 %vm91_vm0, %v39_v48  ;;  %426 = vmatmul.msk.f32.gmra.mxu1 %vm91_vm0, %v39_v48 }
  0x66   :  { %443 = vmatmul.msk.f32.gmra.mxu2 %vm91_vm0, %v40_v49  ;;  %447 = vmatmul.msk.f32.gmra.mxu3 %vm91_vm0, %v642_v38 }
  0x6a   :  { %411 = vmatmul.msk.f32.gmra.mxu0 %vm91_vm0, %v40_v49  ;;  %427 = vmatmul.msk.f32.gmra.mxu1 %vm91_vm0, %v40_v49 }
  0x6e   :  { %444 = vmatmul.msk.f32.gmra.mxu2 %vm91_vm0, %v41_v50  ;;  %448 = vmatmul.msk.f32.gmra.mxu3 %vm91_vm0, %v45_v40 }
  0x72   :  { %412 = vmatmul.msk.f32.gmra.mxu0 %vm91_vm0, %v41_v50  ;;  %428 = vmatmul.msk.f32.gmra.mxu1 %vm91_vm0, %v41_v50 }
  0x76   :  { %445 = vmatmul.msk.f32.gmra.mxu2 %vm91_vm0, %v42_v51  ;;  %449 = vmatmul.msk.f32.gmra.mxu3 %vm91_vm0, %v46_v42 }
  0x7a   :  { %413 = vmatmul.msk.f32.gmra.mxu0 %vm91_vm0, %v42_v51  ;;  %429 = vmatmul.msk.f32.gmra.mxu1 %vm91_vm0, %v42_v51 }
  0x9f   :  { %v157_v56 = vpop.f32.mrf.mxu0  ;;  %v222_v57 = vpop.f32.mrf.mxu1 }
  0xa0   :  { %v158_v58 = vadd.f32 %v157_v56, %v749_v53  ;;  %v223_v59 = vadd.f32 %v222_v57, %v751_v54 }
  0xa1   :  { %v193_v60 = vpop.f32.mrf.mxu3  ;;  %v287_v61 = vpop.f32.mrf.mxu2 }
  0xa2   :  { %335 = vst [vmem:[#allocation5] sm:$0xff] %v158_v58  ;;  %v194_v62 = vadd.f32 %v193_v60, %v749_v53  ;;  %v288_v63 = vadd.f32 %v287_v61, %v753_v55 }
  0xa3   :  { %336 = vst [vmem:[#allocation5 + $0x8] sm:$0xff] %v223_v59 }
  0xa4   :  { %371 = vst [vmem:[#allocation5 + $0x120] sm:$0xff] %v194_v62 }
  0xa5   :  { %337 = vst [vmem:[#allocation5 + $0x10] sm:$0xff] %v288_v63 }
  0xa7   :  { %v160_v0 = vpop.f32.mrf.mxu0  ;;  %v225_v1 = vpop.f32.mrf.mxu1 }
  0xa8   :  { %v161_v2 = vadd.f32 %v160_v0, %v749_v53  ;;  %v226_v3 = vadd.f32 %v225_v1, %v751_v54 }
  0xa9   :  { %v196_v4 = vpop.f32.mrf.mxu3  ;;  %v290_v5 = vpop.f32.mrf.mxu2 }
  0xaa   :  { %338 = vst [vmem:[#allocation5 + $0x18] sm:$0xff] %v161_v2  ;;  %v197_v6 = vadd.f32 %v196_v4, %v749_v53  ;;  %v291_v7 = vadd.f32 %v290_v5, %v753_v55 }
  0xab   :  { %339 = vst [vmem:[#allocation5 + $0x20] sm:$0xff] %v226_v3 }
  0xac   :  { %374 = vst [vmem:[#allocation5 + $0x138] sm:$0xff] %v197_v6 }
  0xad   :  { %340 = vst [vmem:[#allocation5 + $0x28] sm:$0xff] %v291_v7 }
  0xaf   :  { %v163_v8 = vpop.f32.mrf.mxu0  ;;  %v228_v9 = vpop.f32.mrf.mxu1 }
  0xb0   :  { %v164_v10 = vadd.f32 %v163_v8, %v749_v53  ;;  %v229_v11 = vadd.f32 %v228_v9, %v751_v54 }
  0xb1   :  { %v199_v12 = vpop.f32.mrf.mxu3  ;;  %v293_v13 = vpop.f32.mrf.mxu2 }
  0xb2   :  { %341 = vst [vmem:[#allocation5 + $0x30] sm:$0xff] %v164_v10  ;;  %v200_v14 = vadd.f32 %v199_v12, %v749_v53  ;;  %v294_v15 = vadd.f32 %v293_v13, %v753_v55 }
  0xb3   :  { %342 = vst [vmem:[#allocation5 + $0x38] sm:$0xff] %v229_v11 }
  0xb4   :  { %377 = vst [vmem:[#allocation5 + $0x150] sm:$0xff] %v200_v14 }
  0xb5   :  { %343 = vst [vmem:[#allocation5 + $0x40] sm:$0xff] %v294_v15 }
  0xb7   :  { %v166_v16 = vpop.f32.mrf.mxu0  ;;  %v231_v17 = vpop.f32.mrf.mxu1 }
  0xb8   :  { %v167_v18 = vadd.f32 %v166_v16, %v749_v53  ;;  %v232_v19 = vadd.f32 %v231_v17, %v751_v54 }
  0xb9   :  { %v202_v20 = vpop.f32.mrf.mxu3  ;;  %v296_v21 = vpop.f32.mrf.mxu2 }
  0xba   :  { %344 = vst [vmem:[#allocation5 + $0x48] sm:$0xff] %v167_v18  ;;  %v203_v22 = vadd.f32 %v202_v20, %v749_v53  ;;  %v297_v23 = vadd.f32 %v296_v21, %v753_v55 }
  0xbb   :  { %345 = vst [vmem:[#allocation5 + $0x50] sm:$0xff] %v232_v19 }
  0xbc   :  { %380 = vst [vmem:[#allocation5 + $0x168] sm:$0xff] %v203_v22 }
  0xbd   :  { %346 = vst [vmem:[#allocation5 + $0x58] sm:$0xff] %v297_v23 }
  0xbf   :  { %v169_v24 = vpop.f32.mrf.mxu0  ;;  %v234_v25 = vpop.f32.mrf.mxu1 }
  0xc0   :  { %v170_v26 = vadd.f32 %v169_v24, %v749_v53  ;;  %v235_v27 = vadd.f32 %v234_v25, %v751_v54 }
  0xc1   :  { %v258_v28 = vpop.f32.mrf.mxu3  ;;  %v299_v29 = vpop.f32.mrf.mxu2 }
  0xc2   :  { %347 = vst [vmem:[#allocation5 + $0x60] sm:$0xff] %v170_v26  ;;  %v259_v30 = vadd.f32 %v258_v28, %v751_v54  ;;  %v300_v31 = vadd.f32 %v299_v29, %v753_v55 }
  0xc3   :  { %348 = vst [vmem:[#allocation5 + $0x68] sm:$0xff] %v235_v27 }
  0xc4   :  { %372 = vst [vmem:[#allocation5 + $0x128] sm:$0xff] %v259_v30 }
  0xc5   :  { %349 = vst [vmem:[#allocation5 + $0x70] sm:$0xff] %v300_v31 }
  0xc7   :  { %v172_v32 = vpop.f32.mrf.mxu0  ;;  %v237_v33 = vpop.f32.mrf.mxu1 }
  0xc8   :  { %v173_v34 = vadd.f32 %v172_v32, %v749_v53  ;;  %v238_v35 = vadd.f32 %v237_v33, %v751_v54 }
  0xc9   :  { %v261_v36 = vpop.f32.mrf.mxu3  ;;  %v302_v37 = vpop.f32.mrf.mxu2 }
  0xca   :  { %350 = vst [vmem:[#allocation5 + $0x78] sm:$0xff] %v173_v34  ;;  %v262_v38 = vadd.f32 %v261_v36, %v751_v54  ;;  %v303_v39 = vadd.f32 %v302_v37, %v753_v55 }
  0xcb   :  { %351 = vst [vmem:[#allocation5 + $0x80] sm:$0xff] %v238_v35 }
  0xcc   :  { %375 = vst [vmem:[#allocation5 + $0x140] sm:$0xff] %v262_v38 }
  0xcd   :  { %352 = vst [vmem:[#allocation5 + $0x88] sm:$0xff] %v303_v39 }
  0xcf   :  { %v175_v40 = vpop.f32.mrf.mxu0  ;;  %v240_v41 = vpop.f32.mrf.mxu1 }
  0xd0   :  { %v176_v42 = vadd.f32 %v175_v40, %v749_v53  ;;  %v241_v43 = vadd.f32 %v240_v41, %v751_v54 }
  0xd1   :  { %v264_v44 = vpop.f32.mrf.mxu3  ;;  %v305_v45 = vpop.f32.mrf.mxu2 }
  0xd2   :  { %353 = vst [vmem:[#allocation5 + $0x90] sm:$0xff] %v176_v42  ;;  %v265_v46 = vadd.f32 %v264_v44, %v751_v54  ;;  %v306_v47 = vadd.f32 %v305_v45, %v753_v55 }
  0xd3   :  { %354 = vst [vmem:[#allocation5 + $0x98] sm:$0xff] %v241_v43 }
  0xd4   :  { %378 = vst [vmem:[#allocation5 + $0x158] sm:$0xff] %v265_v46 }
  0xd5   :  { %355 = vst [vmem:[#allocation5 + $0xa0] sm:$0xff] %v306_v47 }
  0xd7   :  { %v178_v48 = vpop.f32.mrf.mxu0  ;;  %v243_v49 = vpop.f32.mrf.mxu1 }
  0xd8   :  { %v179_v50 = vadd.f32 %v178_v48, %v749_v53  ;;  %v244_v51 = vadd.f32 %v243_v49, %v751_v54 }
  0xd9   :  { %v267_v52 = vpop.f32.mrf.mxu3  ;;  %v308_v56 = vpop.f32.mrf.mxu2 }
  0xda   :  { %356 = vst [vmem:[#allocation5 + $0xa8] sm:$0xff] %v179_v50  ;;  %v268_v57 = vadd.f32 %v267_v52, %v751_v54  ;;  %v309_v58 = vadd.f32 %v308_v56, %v753_v55 }
  0xdb   :  { %357 = vst [vmem:[#allocation5 + $0xb0] sm:$0xff] %v244_v51 }
  0xdc   :  { %381 = vst [vmem:[#allocation5 + $0x170] sm:$0xff] %v268_v57 }
  0xdd   :  { %358 = vst [vmem:[#allocation5 + $0xb8] sm:$0xff] %v309_v58 }
  0xdf   :  { %v181_v59 = vpop.f32.mrf.mxu0  ;;  %v246_v60 = vpop.f32.mrf.mxu1 }
  0xe0   :  { %v182_v61 = vadd.f32 %v181_v59, %v749_v53  ;;  %v247_v62 = vadd.f32 %v246_v60, %v751_v54 }
  0xe1   :  { %v311_v63 = vpop.f32.mrf.mxu2  ;;  %v323_v0 = vpop.f32.mrf.mxu3 }
  0xe2   :  { %359 = vst [vmem:[#allocation5 + $0xc0] sm:$0xff] %v182_v61  ;;  %v312_v1 = vadd.f32 %v311_v63, %v753_v55  ;;  %v324_v2 = vadd.f32 %v323_v0, %v753_v55 }
  0xe3   :  { %360 = vst [vmem:[#allocation5 + $0xc8] sm:$0xff] %v247_v62 }
  0xe4   :  { %361 = vst [vmem:[#allocation5 + $0xd0] sm:$0xff] %v312_v1 }
  0xe5   :  { %373 = vst [vmem:[#allocation5 + $0x130] sm:$0xff] %v324_v2 }
  0xe7   :  { %v184_v3 = vpop.f32.mrf.mxu0  ;;  %v249_v4 = vpop.f32.mrf.mxu1 }
  0xe8   :  { %v185_v5 = vadd.f32 %v184_v3, %v749_v53  ;;  %v250_v6 = vadd.f32 %v249_v4, %v751_v54 }
  0xe9   :  { %v314_v7 = vpop.f32.mrf.mxu2  ;;  %v326_v8 = vpop.f32.mrf.mxu3 }
  0xea   :  { %362 = vst [vmem:[#allocation5 + $0xd8] sm:$0xff] %v185_v5  ;;  %v315_v9 = vadd.f32 %v314_v7, %v753_v55  ;;  %v327_v10 = vadd.f32 %v326_v8, %v753_v55 }
  0xeb   :  { %363 = vst [vmem:[#allocation5 + $0xe0] sm:$0xff] %v250_v6 }
  0xec   :  { %364 = vst [vmem:[#allocation5 + $0xe8] sm:$0xff] %v315_v9 }
  0xed   :  { %376 = vst [vmem:[#allocation5 + $0x148] sm:$0xff] %v327_v10 }
  0xef   :  { %v187_v11 = vpop.f32.mrf.mxu0  ;;  %v252_v12 = vpop.f32.mrf.mxu1 }
  0xf0   :  { %v188_v13 = vadd.f32 %v187_v11, %v749_v53  ;;  %v253_v14 = vadd.f32 %v252_v12, %v751_v54 }
  0xf1   :  { %v317_v15 = vpop.f32.mrf.mxu2  ;;  %v329_v16 = vpop.f32.mrf.mxu3 }
  0xf2   :  { %365 = vst [vmem:[#allocation5 + $0xf0] sm:$0xff] %v188_v13  ;;  %v318_v17 = vadd.f32 %v317_v15, %v753_v55  ;;  %v330_v18 = vadd.f32 %v329_v16, %v753_v55 }
  0xf3   :  { %366 = vst [vmem:[#allocation5 + $0xf8] sm:$0xff] %v253_v14 }
  0xf4   :  { %367 = vst [vmem:[#allocation5 + $0x100] sm:$0xff] %v318_v17 }
  0xf5   :  { %379 = vst [vmem:[#allocation5 + $0x160] sm:$0xff] %v330_v18 }
  0xf7   :  { %v190_v19 = vpop.f32.mrf.mxu0  ;;  %v255_v20 = vpop.f32.mrf.mxu1 }
  0xf8   :  { %v191_v21 = vadd.f32 %v190_v19, %v749_v53  ;;  %v256_v22 = vadd.f32 %v255_v20, %v751_v54 }
  0xf9   :  { %v320_v23 = vpop.f32.mrf.mxu2  ;;  %v332_v24 = vpop.f32.mrf.mxu3 }
  0xfa   :  { %368 = vst [vmem:[#allocation5 + $0x108] sm:$0xff] %v191_v21  ;;  %v321_v25 = vadd.f32 %v320_v23, %v753_v55  ;;  %v333_v26 = vadd.f32 %v332_v24, %v753_v55 }
  0xfb   :  { %369 = vst [vmem:[#allocation5 + $0x110] sm:$0xff] %v256_v22 }
  0xfc   :  { %370 = vst [vmem:[#allocation5 + $0x118] sm:$0xff] %v321_v25 }
  0xfd   :  { %382 = vst [vmem:[#allocation5 + $0x178] sm:$0xff] %v333_v26 }
  0xfe   :  { %395 = dma.vmem_to_hbm [thread:$0]  %s388_s2, 6144, %s390_s28, [#allocation4], %s543_s17, %s543_s17, %s544_s18  }
  0xff   :  { %540 = dma.done.wait [#allocation4], 6144  }
 0x100   :  { %541 = vsyncadd [#allocation4], 4294961152 }
 0x101   :  { %400 = vsyncpa [#allocation3], 1 }
 0x102   :  { %401 = vsyncpa [#allocation4], 1 }

</bundles_post_ra>
